<compile_context>
chip_gen: v6e
topology: v6e:2x2x1
jax: 0.10.0
libtpu: 0.0.40
codegen_flags: <defaults>
</compile_context>

<pallas_src>
import functools

import jax
import jax.numpy as jnp
from jax.experimental import pallas as pl
from jax.experimental.pallas import tpu as pltpu

LEAKY_SLOPE = 0.01  # nn.LeakyReLU() default negative_slope


def _leaky_relu(x):
    return jnp.where(x > 0, x, LEAKY_SLOPE * x)


def _round_up(n, m):
    return ((n + m - 1) // m) * m


def mapping_kernel(x_ref, w1_ref, b1_ref, w2_ref, b2_ref, wh_ref, bh_ref,
                   out_ref, *, s_dim):
    """Feature-major fused MLP for one batch tile.

    Batch lives on the lane (last) axis so every load/store is lane-dense.
      x_ref  : (encoder_dim, TB)
      w*_ref : PyTorch (out, in) layout weights; biases as (out, 1)
      wh_ref : fused head weight (2*s_dim, hidden) = [W_mu ; W_logvar]
      out_ref: (3*s_dim, TB) packed rows [mu ; logvar ; cov_diag]
    """
    h = jnp.dot(w1_ref[...], x_ref[...],
                preferred_element_type=jnp.float32) + b1_ref[...]
    h = _leaky_relu(h)
    h = jnp.dot(w2_ref[...], h,
                preferred_element_type=jnp.float32) + b2_ref[...]
    h = _leaky_relu(h)
    # Fused mu/logvar head: one MXU pass instead of two.
    head = jnp.dot(wh_ref[...], h,
                   preferred_element_type=jnp.float32) + bh_ref[...]
    # Direct sliced stores (no in-kernel concatenate -> no lane shuffles/temp).
    out_ref[0:2 * s_dim, :] = head
    # TODO(synk): logvar is not clamped (matches PyTorch); exp can overflow to
    # inf for extreme logvar values.
    out_ref[2 * s_dim:3 * s_dim, :] = jnp.exp(head[s_dim:2 * s_dim, :]) + 1e-16


def init_mapping_params(key, encoder_dim, s_dim, hidden_dims=(32, 32)):
    """PyTorch-layout params matching _initialize_weights:
    W (out, in) ~ N(0, 0.1), b (out,) = 0."""
    assert len(hidden_dims) == 2, "kernel is specialized to two hidden layers"
    dims = [encoder_dim] + list(hidden_dims)
    keys = jax.random.split(key, len(hidden_dims) + 2)
    params = {}
    for i, (din, dout) in enumerate(zip(dims[:-1], dims[1:])):
        params[f"w{i + 1}"] = 0.1 * jax.random.normal(
            keys[i], (dout, din), jnp.float32)
        params[f"b{i + 1}"] = jnp.zeros((dout,), jnp.float32)
    h_last = dims[-1]
    params["w_mu"] = 0.1 * jax.random.normal(keys[-2], (s_dim, h_last),
                                             jnp.float32)
    params["b_mu"] = jnp.zeros((s_dim,), jnp.float32)
    params["w_logvar"] = 0.1 * jax.random.normal(keys[-1], (s_dim, h_last),
                                                 jnp.float32)
    params["b_logvar"] = jnp.zeros((s_dim,), jnp.float32)
    return params


def pack_mapping_params(params):
    """Repack PyTorch-layout params into the kernel layout (W @ x matmuls,
    fused mu/logvar head, (out, 1) biases)."""
    return {
        "w1": params["w1"],                                  # (hidden, enc)
        "b1": params["b1"][:, None],                         # (hidden, 1)
        "w2": params["w2"],                                  # (hidden, hidden)
        "b2": params["b2"][:, None],
        "w_head": jnp.concatenate([params["w_mu"], params["w_logvar"]],
                                  axis=0),                   # (2*s, hidden)
        "b_head": jnp.concatenate([params["b_mu"], params["b_logvar"]],
                                  axis=0)[:, None],          # (2*s, 1)
    }


def _choose_batch_tile(B, block_batch):
    if B <= 128:
        return B  # full-extent block; lane sparsity is irrelevant at tiny B
    tb = _round_up(min(block_batch, B), 128)
    # Keep >= 2 grid steps for large B so the "parallel" batch axis can be
    # sharded across both TensorCores on v7x (harmless no-op on v5e/v6e).
    if B > 256:
        tb = min(tb, _round_up(pl.cdiv(B, 2), 128))
    return max(tb, 128)


def mapping_forward(hidden_states, kernel_params, s_dim, *, block_batch=2048):
    """Forward pass of `Mapping`. Returns (mu, logvar, cov_diag) of the
    MultivariateNormal; the dense (B, s, s) covariance is not built."""
    B, encoder_dim = hidden_states.shape
    hidden = kernel_params["w1"].shape[0]

    x = hidden_states
    if x.dtype != jnp.float32:
        # Kept f32 end-to-end for numerical parity with the PyTorch reference.
        # TODO(synk): if numerics allow, casting x to bf16 here roughly halves
        # input HBM traffic on this bandwidth-bound kernel.
        x = x.astype(jnp.float32)

    # Feature-major: batch on the lane axis -> lane-dense input DMA and
    # output stores.  Ideally the producer emits (encoder_dim, B) directly;
    # this one-time transpose is still cheaper than lane-sparse DMA.
    xt = x.T  # (encoder_dim, B)

    tb = _choose_batch_tile(B, block_batch)
    grid = (pl.cdiv(B, tb),)  # no jnp.pad: Pallas handles the boundary block

    out = pl.pallas_call(
        functools.partial(mapping_kernel, s_dim=s_dim),
        out_shape=jax.ShapeDtypeStruct((3 * s_dim, B), jnp.float32),
        grid=grid,
        in_specs=[
            # Activations: tiled along the batch/lane axis, double-buffered.
            pl.BlockSpec((encoder_dim, tb), lambda i: (0, i)),
            # Weights & biases: same block every step -> stay VMEM-resident.
            # (Kept as separate tiny inputs for alignment robustness; total
            #  resident footprint is ~10 KB, descriptor overhead negligible.)
            pl.BlockSpec((hidden, encoder_dim), lambda i: (0, 0)),
            pl.BlockSpec((hidden, 1), lambda i: (0, 0)),
            pl.BlockSpec((hidden, hidden), lambda i: (0, 0)),
            pl.BlockSpec((hidden, 1), lambda i: (0, 0)),
            pl.BlockSpec((2 * s_dim, hidden), lambda i: (0, 0)),
            pl.BlockSpec((2 * s_dim, 1), lambda i: (0, 0)),
        ],
        out_specs=pl.BlockSpec((3 * s_dim, tb), lambda i: (0, i)),
        compiler_params=pltpu.CompilerParams(
            dimension_semantics=("parallel",)),
    )(xt, kernel_params["w1"], kernel_params["b1"], kernel_params["w2"],
      kernel_params["b2"], kernel_params["w_head"], kernel_params["b_head"])

    mu = out[:s_dim].T
    logvar = out[s_dim:2 * s_dim].T
    cov_diag = out[2 * s_dim:].T
    # TODO(synk): torch.distributions.MultivariateNormal has no JAX/Pallas
    # equivalent; we return its defining parameters (mu, logvar, diag of cov).
    return mu, logvar, cov_diag


if __name__ == "__main__":
    encoder_dim = 16
    s_dim = 8
    hidden_dims = (32, 32)

    key = jax.random.PRNGKey(0)
    k_param, k_x1, k_x2 = jax.random.split(key, 3)
    torch_params = init_mapping_params(k_param, encoder_dim, s_dim, hidden_dims)
    kernel_params = pack_mapping_params(torch_params)

    # Pure-JAX reference built directly from the PyTorch-layout (out, in)
    # per-layer weights (y = x @ W.T + b), NOT from the fused kernel params,
    # so the kernel is validated against the original module math.
    def ref(x, p):
        h = _leaky_relu(x @ p["w1"].T + p["b1"])
        h = _leaky_relu(h @ p["w2"].T + p["b2"])
        mu = h @ p["w_mu"].T + p["b_mu"]
        lv = h @ p["w_logvar"].T + p["b_logvar"]
        return mu, lv, jnp.exp(lv) + 1e-16

    # Case 1: tiny batch, single grid step.
    x1 = jax.random.normal(k_x1, (8, encoder_dim), jnp.float32)
    mu, logvar, cov_diag = mapping_forward(x1, kernel_params, s_dim)
    jax.block_until_ready((mu, logvar, cov_diag))
    mu_r, lv_r, cd_r = ref(x1, torch_params)
    assert mu.shape == (8, s_dim) and logvar.shape == (8, s_dim)
    assert cov_diag.shape == (8, s_dim)
    assert jnp.allclose(mu, mu_r, atol=1e-5), "mu mismatch"
    assert jnp.allclose(logvar, lv_r, atol=1e-5), "logvar mismatch"
    assert jnp.allclose(cov_diag, cd_r, atol=1e-5), "cov_diag mismatch"

    # Case 2: batch not a multiple of the tile -> exercises the boundary
    # block (no wrapper padding) and a multi-step parallel batch grid.
    x2 = jax.random.normal(k_x2, (200, encoder_dim), jnp.float32)
    mu2, lv2, cd2 = mapping_forward(x2, kernel_params, s_dim, block_batch=128)
    jax.block_until_ready((mu2, lv2, cd2))
    mu_r2, lv_r2, cd_r2 = ref(x2, torch_params)
    assert jnp.allclose(mu2, mu_r2, atol=1e-5), "mu mismatch (tiled)"
    assert jnp.allclose(lv2, lv_r2, atol=1e-5), "logvar mismatch (tiled)"
    assert jnp.allclose(cd2, cd_r2, atol=1e-5), "cov_diag mismatch (tiled)"

    print("KERNEL_OK")
</pallas_src>

<mosaic_0001>
module attributes {stable_mosaic.version = 11 : i64} {
  func.func @mapping_kernel(%arg0: i32, %arg1: memref<16x8xf32, #tpu.memory_space<vmem>>, %arg2: memref<32x16xf32, #tpu.memory_space<vmem>>, %arg3: memref<32x1xf32, #tpu.memory_space<vmem>>, %arg4: memref<32x32xf32, #tpu.memory_space<vmem>>, %arg5: memref<32x1xf32, #tpu.memory_space<vmem>>, %arg6: memref<16x32xf32, #tpu.memory_space<vmem>>, %arg7: memref<16x1xf32, #tpu.memory_space<vmem>>, %arg8: memref<24x8xf32, #tpu.memory_space<vmem>>) attributes {dimension_semantics = [#tpu.dimension_semantics<parallel>], iteration_bounds = array<i64: 1>, scalar_prefetch = 0 : i64, scratch_operands = 0 : i64, tpu.core_type = #tpu.core_type<tc>, window_params = [{transform_indices = @transform_0, window_bounds = array<i64: 16, 8>}, {pipeline_mode = #tpu.pipeline_mode<synchronous>, transform_indices = @transform_1, window_bounds = array<i64: 32, 16>}, {pipeline_mode = #tpu.pipeline_mode<synchronous>, transform_indices = @transform_2, window_bounds = array<i64: 32, 1>}, {pipeline_mode = #tpu.pipeline_mode<synchronous>, transform_indices = @transform_3, window_bounds = array<i64: 32, 32>}, {pipeline_mode = #tpu.pipeline_mode<synchronous>, transform_indices = @transform_4, window_bounds = array<i64: 32, 1>}, {pipeline_mode = #tpu.pipeline_mode<synchronous>, transform_indices = @transform_5, window_bounds = array<i64: 16, 32>}, {pipeline_mode = #tpu.pipeline_mode<synchronous>, transform_indices = @transform_6, window_bounds = array<i64: 16, 1>}, {transform_indices = @transform_7, window_bounds = array<i64: 24, 8>}]} {
    %c0 = arith.constant 0 : index
    %c0_0 = arith.constant 0 : index
    %0 = vector.load %arg2[%c0, %c0_0] : memref<32x16xf32, #tpu.memory_space<vmem>>, vector<32x16xf32>
    %c0_1 = arith.constant 0 : index
    %c0_2 = arith.constant 0 : index
    %1 = vector.load %arg1[%c0_1, %c0_2] : memref<16x8xf32, #tpu.memory_space<vmem>>, vector<16x8xf32>
    %cst = arith.constant dense<0.000000e+00> : vector<32x8xf32>
    %2 = tpu.matmul %0, %1, %cst {dimension_numbers = #tpu.dot_dimension_numbers<[1], [0], [0], [1], [0, 0, 1, 1], [], []>} : vector<32x16xf32>, vector<16x8xf32>, vector<32x8xf32> -> vector<32x8xf32>
    %c0_3 = arith.constant 0 : index
    %c0_4 = arith.constant 0 : index
    %3 = vector.load %arg3[%c0_3, %c0_4] : memref<32x1xf32, #tpu.memory_space<vmem>>, vector<32x1xf32>
    %4 = vector.broadcast %3 : vector<32x1xf32> to vector<32x8xf32>
    %5 = arith.addf %2, %4 : vector<32x8xf32>
    %cst_5 = arith.constant 0.000000e+00 : f32
    %6 = vector.broadcast %cst_5 : f32 to vector<32x8xf32>
    %7 = arith.cmpf ogt, %5, %6 : vector<32x8xf32>
    %cst_6 = arith.constant 0.00999999977 : f32
    %8 = vector.broadcast %cst_6 : f32 to vector<32x8xf32>
    %9 = arith.mulf %8, %5 : vector<32x8xf32>
    %10 = arith.select %7, %5, %9 : vector<32x8xi1>, vector<32x8xf32>
    %c0_7 = arith.constant 0 : index
    %c0_8 = arith.constant 0 : index
    %11 = vector.load %arg4[%c0_7, %c0_8] : memref<32x32xf32, #tpu.memory_space<vmem>>, vector<32x32xf32>
    %cst_9 = arith.constant dense<0.000000e+00> : vector<32x8xf32>
    %12 = tpu.matmul %11, %10, %cst_9 {dimension_numbers = #tpu.dot_dimension_numbers<[1], [0], [0], [1], [0, 0, 1, 1], [], []>} : vector<32x32xf32>, vector<32x8xf32>, vector<32x8xf32> -> vector<32x8xf32>
    %c0_10 = arith.constant 0 : index
    %c0_11 = arith.constant 0 : index
    %13 = vector.load %arg5[%c0_10, %c0_11] : memref<32x1xf32, #tpu.memory_space<vmem>>, vector<32x1xf32>
    %14 = vector.broadcast %13 : vector<32x1xf32> to vector<32x8xf32>
    %15 = arith.addf %12, %14 : vector<32x8xf32>
    %cst_12 = arith.constant 0.000000e+00 : f32
    %16 = vector.broadcast %cst_12 : f32 to vector<32x8xf32>
    %17 = arith.cmpf ogt, %15, %16 : vector<32x8xf32>
    %cst_13 = arith.constant 0.00999999977 : f32
    %18 = vector.broadcast %cst_13 : f32 to vector<32x8xf32>
    %19 = arith.mulf %18, %15 : vector<32x8xf32>
    %20 = arith.select %17, %15, %19 : vector<32x8xi1>, vector<32x8xf32>
    %c0_14 = arith.constant 0 : index
    %c0_15 = arith.constant 0 : index
    %21 = vector.load %arg6[%c0_14, %c0_15] : memref<16x32xf32, #tpu.memory_space<vmem>>, vector<16x32xf32>
    %cst_16 = arith.constant dense<0.000000e+00> : vector<16x8xf32>
    %22 = tpu.matmul %21, %20, %cst_16 {dimension_numbers = #tpu.dot_dimension_numbers<[1], [0], [0], [1], [0, 0, 1, 1], [], []>} : vector<16x32xf32>, vector<32x8xf32>, vector<16x8xf32> -> vector<16x8xf32>
    %c0_17 = arith.constant 0 : index
    %c0_18 = arith.constant 0 : index
    %23 = vector.load %arg7[%c0_17, %c0_18] : memref<16x1xf32, #tpu.memory_space<vmem>>, vector<16x1xf32>
    %24 = vector.broadcast %23 : vector<16x1xf32> to vector<16x8xf32>
    %25 = arith.addf %22, %24 : vector<16x8xf32>
    %c0_19 = arith.constant 0 : index
    %c0_20 = arith.constant 0 : index
    %26 = vector.load %arg8[%c0_19, %c0_20] : memref<24x8xf32, #tpu.memory_space<vmem>>, vector<16x8xf32>
    tpu.vector_store %arg8[%c0_19, %c0_20], %25 {strides = array<i32>} : memref<24x8xf32, #tpu.memory_space<vmem>>, vector<16x8xf32>,
    %27 = vector.extract_strided_slice %25 {offsets = [8, 0], sizes = [8, 8], strides = [1, 1]} : vector<16x8xf32> to vector<8x8xf32>
    %28 = math.exp %27 : vector<8x8xf32>
    %cst_21 = arith.constant 1.000000e-16 : f32
    %29 = vector.broadcast %cst_21 : f32 to vector<8x8xf32>
    %30 = arith.addf %28, %29 : vector<8x8xf32>
    %c16 = arith.constant 16 : index
    %c0_22 = arith.constant 0 : index
    %31 = vector.load %arg8[%c16, %c0_22] : memref<24x8xf32, #tpu.memory_space<vmem>>, vector<8x8xf32>
    tpu.vector_store %arg8[%c16, %c0_22], %30 {strides = array<i32>} : memref<24x8xf32, #tpu.memory_space<vmem>>, vector<8x8xf32>,
    return
  }
  func.func @transform_0(%arg0: i32) -> (i32, i32) {
    %c0_i32 = arith.constant 0 : i32
    %c0_i32_0 = arith.constant 0 : i32
    return %c0_i32, %arg0 : i32, i32
  }
  func.func @transform_1(%arg0: i32) -> (i32, i32) {
    %c0_i32 = arith.constant 0 : i32
    %c0_i32_0 = arith.constant 0 : i32
    %c0_i32_1 = arith.constant 0 : i32
    return %c0_i32, %c0_i32_0 : i32, i32
  }
  func.func @transform_2(%arg0: i32) -> (i32, i32) {
    %c0_i32 = arith.constant 0 : i32
    %c0_i32_0 = arith.constant 0 : i32
    %c0_i32_1 = arith.constant 0 : i32
    return %c0_i32, %c0_i32_0 : i32, i32
  }
  func.func @transform_3(%arg0: i32) -> (i32, i32) {
    %c0_i32 = arith.constant 0 : i32
    %c0_i32_0 = arith.constant 0 : i32
    %c0_i32_1 = arith.constant 0 : i32
    return %c0_i32, %c0_i32_0 : i32, i32
  }
  func.func @transform_4(%arg0: i32) -> (i32, i32) {
    %c0_i32 = arith.constant 0 : i32
    %c0_i32_0 = arith.constant 0 : i32
    %c0_i32_1 = arith.constant 0 : i32
    return %c0_i32, %c0_i32_0 : i32, i32
  }
  func.func @transform_5(%arg0: i32) -> (i32, i32) {
    %c0_i32 = arith.constant 0 : i32
    %c0_i32_0 = arith.constant 0 : i32
    %c0_i32_1 = arith.constant 0 : i32
    return %c0_i32, %c0_i32_0 : i32, i32
  }
  func.func @transform_6(%arg0: i32) -> (i32, i32) {
    %c0_i32 = arith.constant 0 : i32
    %c0_i32_0 = arith.constant 0 : i32
    %c0_i32_1 = arith.constant 0 : i32
    return %c0_i32, %c0_i32_0 : i32, i32
  }
  func.func @transform_7(%arg0: i32) -> (i32, i32) {
    %c0_i32 = arith.constant 0 : i32
    %c0_i32_0 = arith.constant 0 : i32
    return %c0_i32, %arg0 : i32, i32
  }
}

</mosaic_0001>

<bundles_post_ra>
// kernel: tpu_custom_call.1
= control target key start
LH: loop header
LB: loop body
LE: loop exit
PB: predicated region body
PF: predicated region fallthrough
CT: control target
= control target key end

     0   :  { %vm56_vm0 = vcmask 130048   ;;  %v480_v3 = vmov 0   ;;  %vm194_vm1 = vcmask 261120   ;;  %vm399_vm10 = vcmask 64512   ;;  %s606_s0 = inlined_call_operand.vmem [shape: f32[16,8], index: 0, kind: input, shape index: {}]   ;;  %s607_s1 = inlined_call_operand.vmem [shape: f32[32,16], index: 1, kind: input, shape index: {}]   ;;  %s608_s2 = inlined_call_operand.vmem [shape: f32[32,1], index: 2, kind: input, shape index: {}]   ;;  %s609_s4 = inlined_call_operand.vmem [shape: f32[32,1], index: 4, kind: input, shape index: {}]   ;;  %s610_s6 = inlined_call_operand.vmem [shape: f32[16,1], index: 6, kind: input, shape index: {}]   ;;  %s611_s3 = inlined_call_operand.vmem [shape: f32[32,32], index: 3, kind: input, shape index: {}]   ;;  %s612_s5 = inlined_call_operand.vmem [shape: f32[16,32], index: 5, kind: input, shape index: {}]   ;;  %s613_s7 = inlined_call_operand.vmem [shape: f32[24,8], index: 7, kind: output, shape index: {}]  }
   0x1   :  { %v31_v0 = vld [vmem:[%s606_s0 + $0x8] sm:$0xff]  ;;  %v30_v1 = vld [vmem:[%s606_s0] sm:$0xff]  ;;  %476 = vset.pattern.permute.xlu0 %v480_v3  ;;  %477 = vset.pattern.permute.xlu1 %v480_v3  ;;  %v35_v5 = vld [vmem:[%s608_s2 + $0x18] sm:$0xff] }
   0x2   :  { %v26_v2 = vld [vmem:[%s607_s1] sm:$0xff]  ;;  %440 = vmatprep.subr.mxu0 %v31_v0  ;;  %v27_v4 = vld [vmem:[%s607_s1 + $0x8] sm:$0xff]  ;;  %v28_v7 = vld [vmem:[%s607_s1 + $0x10] sm:$0xff]  ;;  %53 = vperm.xlu0 %476, %v35_v5  }
   0x3   :  { %444 = vmatprep.mubr.msk.f32.mxu0 %vm56_vm0, %v26_v2  ;;  %441 = vmatpush3.msra.mxu0 %v31_v0  ;;  %v33_v6 = vld [vmem:[%s608_s2 + $0x8] sm:$0xff]  ;;  %v34_v8 = vld [vmem:[%s608_s2 + $0x10] sm:$0xff]  ;;  %v32_v9 = vld [vmem:[%s608_s2] sm:$0xff] }
   0x4   :  { %442 = vmatprep.subr.mxu0 %v30_v1  ;;  %43 = vperm.xlu1 %477, %v33_v6   ;;  %v29_v10 = vld [vmem:[%s607_s1 + $0x18] sm:$0xff]  ;;  %v172_v12 = vld [vmem:[%s609_s4 + $0x10] sm:$0xff]  ;;  %v171_v13 = vld [vmem:[%s609_s4 + $0x8] sm:$0xff] }
   0x5   :  { %443 = vmatpush3.msra.mxu0 %v30_v1  ;;  %v173_v11 = vld [vmem:[%s609_s4 + $0x18] sm:$0xff]  ;;  %v170_v14 = vld [vmem:[%s609_s4] sm:$0xff]  ;;  %v307_v15 = vld [vmem:[%s610_s6 + $0x8] sm:$0xff] }
   0x6   :  { %445 = vmatmul.mubr.msk.f32.vlgmr.msra.gmra.mxu0 %vm56_vm0, %v27_v4  ;;  %48 = vperm.xlu0 %476, %v34_v8   ;;  %v306_v16 = vld [vmem:[%s610_s6] sm:$0xff]  ;;  %v167_v38 = vld [vmem:[%s611_s3 + $0x8] sm:$0xff]  ;;  %v168_v39 = vld [vmem:[%s611_s3 + $0x10] sm:$0xff] }
   0x7   :  { %447 = vmatprep.mubr.msk.f32.mxu0 %vm56_vm0, %v28_v7  ;;  %v166_v17 = vld [vmem:[%s611_s3] sm:$0xff]  ;;  %v169_v40 = vld [vmem:[%s611_s3 + $0x18] sm:$0xff]  ;;  %v305_v62 = vld [vmem:[%s612_s5 + $0x8] sm:$0xff] }
   0x8   :  { %38 = vperm.xlu1 %477, %v32_v9   ;;  %458 = vmatprep.mubr.msk.f32.mxu1 %vm194_vm1, %v166_v17  ;;  %v304_v41 = vld [vmem:[%s612_s5] sm:$0xff] }
   0xa   :  { %448 = vmatmul.mubr.msk.f32.gmra.mxu0 %vm56_vm0, %v29_v10  ;;  %191 = vperm.xlu0 %476, %v173_v11  }
   0xb   :  { %472 = vmatprep.mubr.msk.f32.mxu0 %vm194_vm1, %v304_v41 }
   0xc   :  { %186 = vperm.xlu1 %477, %v172_v12  }
   0xe   :  { %181 = vperm.xlu0 %476, %v171_v13  }
  0x10   :  { %176 = vperm.xlu1 %477, %v170_v14  }
  0x12   :  { %315 = vperm.xlu0 %476, %v307_v15  }
  0x14   :  { %310 = vperm.xlu1 %477, %v306_v16  }
  0x7d   :  { %v54_v18 = vpop.permute.xlu0 %53 }
  0x7f   :  { %v44_v19 = vpop.permute.xlu1 %43 }
  0x81   :  { %v49_v23 = vpop.permute.xlu0 %48 }
  0x83   :  { %v39_v26 = vpop.permute.xlu1 %38 }
  0x85   :  { %v192_v42 = vpop.permute.xlu0 %191 }
  0x87   :  { %v187_v43 = vpop.permute.xlu1 %186 }
  0x89   :  { %v182_v46 = vpop.permute.xlu0 %181 }
  0x8b   :  { %v177_v50 = vpop.permute.xlu1 %176 }
  0x8d   :  { %v316_v63 = vpop.permute.xlu0 %315 }
  0x8f   :  { %v311_v2 = vpop.permute.xlu1 %310 }
  0xc6   :  { %v446_v20 = vpop.f32.mrf.mxu0 }
  0xc7   :  { %v141_v24 = vadd.f32 %v446_v20, %v44_v19 }
  0xc8   :  { %v135_v21 = vpop.f32.mrf.mxu0 }
  0xc9   :  { %v136_v28 = vadd.f32 %v135_v21, %v39_v26  ;;  %v159_v31 = vmul.f32 0.01, %v141_v24  ;;  %vm155_vm4 = vcmp.gt.f32.partialorder %v141_v24, 0.0 }
  0xca   :  { %v449_v22 = vpop.f32.mrf.mxu0 }
  0xcb   :  { %v151_v25 = vadd.f32 %v449_v22, %v54_v18  ;;  %v158_v34 = vmul.f32 0.01, %v136_v28  ;;  %vm154_vm5 = vcmp.gt.f32.partialorder %v136_v28, 0.0  ;;  %v163_v36 = vsel %vm155_vm4, %v141_v24, %v159_v31 }
  0xcc   :  { %v145_v27 = vpop.f32.mrf.mxu0 }
  0xcd   :  { %v146_v29 = vadd.f32 %v145_v27, %v49_v23  ;;  %vm157_vm2 = vcmp.gt.f32.partialorder %v151_v25, 0.0  ;;  %v161_v30 = vmul.f32 0.01, %v151_v25  ;;  %v162_v37 = vsel %vm154_vm5, %v136_v28, %v158_v34 }
  0xcf   :  { %v160_v32 = vmul.f32 0.01, %v146_v29  ;;  %v165_v33 = vsel %vm157_vm2, %v151_v25, %v161_v30  ;;  %vm156_vm3 = vcmp.gt.f32.partialorder %v146_v29, 0.0 }
  0xd0   :  { %450 = vmatprep.subr.mxu1 %v165_v33 }
  0xd1   :  { %451 = vmatpush3.msra.mxu1 %v165_v33  ;;  %v164_v35 = vsel %vm156_vm3, %v146_v29, %v160_v32 }
  0xd2   :  { %452 = vmatprep.subr.mxu1 %v164_v35 }
  0xd3   :  { %453 = vmatpush3.msra.mxu1 %v164_v35 }
  0xd4   :  { %454 = vmatprep.subr.mxu1 %v163_v36 }
  0xd5   :  { %455 = vmatpush3.msra.mxu1 %v163_v36 }
  0xd6   :  { %456 = vmatprep.subr.mxu1 %v162_v37 }
  0xd7   :  { %457 = vmatpush3.msra.mxu1 %v162_v37 }
  0xd8   :  { %459 = vmatmul.mubr.msk.f32.vlgmr.msra.gmra.mxu1 %vm194_vm1, %v167_v38 }
  0xd9   :  { %461 = vmatprep.mubr.msk.f32.mxu1 %vm194_vm1, %v168_v39 }
  0xdc   :  { %462 = vmatmul.mubr.msk.f32.gmra.mxu1 %vm194_vm1, %v169_v40 }
 0x198   :  { %v460_v44 = vpop.f32.mrf.mxu1 }
 0x199   :  { %v279_v48 = vadd.f32 %v460_v44, %v182_v46 }
 0x19a   :  { %v273_v45 = vpop.f32.mrf.mxu1 }
 0x19b   :  { %v274_v52 = vadd.f32 %v273_v45, %v177_v50  ;;  %v297_v55 = vmul.f32 0.01, %v279_v48  ;;  %vm293_vm8 = vcmp.gt.f32.partialorder %v279_v48, 0.0 }
 0x19c   :  { %v463_v47 = vpop.f32.mrf.mxu1 }
 0x19d   :  { %v289_v49 = vadd.f32 %v463_v47, %v192_v42  ;;  %v296_v58 = vmul.f32 0.01, %v274_v52  ;;  %vm292_vm9 = vcmp.gt.f32.partialorder %v274_v52, 0.0  ;;  %v301_v60 = vsel %vm293_vm8, %v279_v48, %v297_v55 }
 0x19e   :  { %v283_v51 = vpop.f32.mrf.mxu1 }
 0x19f   :  { %v299_v53 = vmul.f32 0.01, %v289_v49  ;;  %v284_v54 = vadd.f32 %v283_v51, %v187_v43  ;;  %vm295_vm6 = vcmp.gt.f32.partialorder %v289_v49, 0.0  ;;  %v300_v61 = vsel %vm292_vm9, %v274_v52, %v296_v58 }
 0x1a1   :  { %v298_v56 = vmul.f32 0.01, %v284_v54  ;;  %v303_v57 = vsel %vm295_vm6, %v289_v49, %v299_v53  ;;  %vm294_vm7 = vcmp.gt.f32.partialorder %v284_v54, 0.0 }
 0x1a2   :  { %464 = vmatprep.subr.mxu0 %v303_v57 }
 0x1a3   :  { %465 = vmatpush3.msra.mxu0 %v303_v57  ;;  %v302_v59 = vsel %vm294_vm7, %v284_v54, %v298_v56 }
 0x1a4   :  { %466 = vmatprep.subr.mxu0 %v302_v59 }
 0x1a5   :  { %467 = vmatpush3.msra.mxu0 %v302_v59 }
 0x1a6   :  { %468 = vmatprep.subr.mxu0 %v301_v60 }
 0x1a7   :  { %469 = vmatpush3.msra.mxu0 %v301_v60 }
 0x1a8   :  { %470 = vmatprep.subr.mxu0 %v300_v61 }
 0x1a9   :  { %471 = vmatpush3.msra.mxu0 %v300_v61 }
 0x1aa   :  { %473 = vmatmul.mubr.msk.f32.vlgmr.msra.gmra.mxu0 %vm194_vm1, %v305_v62 }
 0x26a   :  { %v474_v0 = vpop.f32.mrf.mxu0 }
 0x26b   :  { %v396_v1 = vadd.f32 %v474_v0, %v316_v63 }
 0x26c   :  { %v390_v3 = vpop.f32.mrf.mxu0 }
 0x26d   :  { %401 = vst.msk [vmem:[%s613_s7 + $0x8] sm:$0xff] %vm399_vm10, %v396_v1  ;;  %v402_v4 = vmul.f32 1.442695, %v396_v1  ;;  %v391_v5 = vadd.f32 %v390_v3, %v311_v2 }
 0x26f   :  { %478 = vpow2.f32 %v402_v4  ;;  %400 = vst.msk [vmem:[%s613_s7] sm:$0xff] %vm399_vm10, %v391_v5 }
 0x27c   :  { %v479_v6 = vpop.eup %478 }
 0x27d   :  { %v404_v7 = vadd.f32 1e-16, %v479_v6 }
 0x27f   :  { %405 = vst.msk [vmem:[%s613_s7 + $0x10] sm:$0xff] %vm399_vm10, %v404_v7 }

</bundles_post_ra>
